<compile_context>
chip_gen: v7x
topology: tpu7x:2x2x1
jax: 0.10.0
libtpu: 0.0.40
codegen_flags: <defaults>
</compile_context>

<pallas_src>
import jax
import jax.numpy as jnp
from jax import lax
from jax.experimental import pallas as pl
from jax.experimental.pallas import tpu as pltpu


def lstm_fused_kernel(x_ref, w_ih_ref, b_ref, w_hh_ref, w_fc_ref, b_fc_ref,
                      out_ref, xg_ref):
    """Fused input projection + LSTM recurrence + final Linear.

    x_ref    : (T*B, D)  f32, time-major within the batch block
    w_ih_ref : (D, 4H)   f32, g-gate columns pre-scaled by 2
    b_ref    : (1, 4H)   f32, combined b_ih + b_hh, g-gate cols pre-scaled by 2
    w_hh_ref : (H, 4H)   bf16, g-gate columns pre-scaled by 2
    w_fc_ref : (H, 128)  bf16, real fc weight in lanes [:4], zero-padded
    b_fc_ref : (1, 128)  f32,  real fc bias in lanes [:4], zero-padded
    out_ref  : (B, 128)  f32,  fc(h_T) in lanes [:4]
    xg_ref   : (T*B, 4H) f32 VMEM scratch: precomputed input-side gates
    """
    TB, _ = x_ref.shape
    H = w_hh_ref.shape[0]
    B = out_ref.shape[0]
    T = TB // B

    # Prologue: input projection for ALL timesteps in one MXU matmul (off the
    # serial h->h critical path), combined LSTM bias folded in.
    xg_ref[...] = (
        jnp.dot(x_ref[...], w_ih_ref[...], preferred_element_type=jnp.float32)
        + b_ref[...])

    w_hh = w_hh_ref[...]  # bf16, held in vregs across the recurrence

    def step(t, carry):
        h, c = carry
        row = pl.multiple_of(t * B, B)
        # (B, 4H) gates: hoisted input part + bf16 recurrent matmul (f32 acc).
        gates = xg_ref[pl.ds(row, B), :] + jnp.dot(
            h.astype(jnp.bfloat16), w_hh, preferred_element_type=jnp.float32)
        # One sigmoid pass over the lane-dense (B, 4H) tile.  The g-gate
        # pre-activations were scaled by 2, so tanh(z) = 2*sigmoid(2z) - 1 is
        # a cheap VPU fma instead of a second EUP pass.
        sg = jax.nn.sigmoid(gates)
        i_g = sg[:, 0 * H:1 * H]
        f_g = sg[:, 1 * H:2 * H]
        g_g = 2.0 * sg[:, 2 * H:3 * H] - 1.0
        o_g = sg[:, 3 * H:4 * H]
        c_new = f_g * c + i_g * g_g
        h_new = o_g * jnp.tanh(c_new)
        return h_new, c_new

    h0 = jnp.zeros((B, H), jnp.float32)
    c0 = jnp.zeros((B, H), jnp.float32)
    h_last, _ = lax.fori_loop(0, T, step, (h0, c0), unroll=min(T, 8))

    # Final Linear on the last hidden state, lane-dense (B, 128) store.
    out = (jnp.dot(h_last.astype(jnp.bfloat16), w_fc_ref[...],
                   preferred_element_type=jnp.float32)
           + b_fc_ref[...])
    out_ref[...] = out.astype(out_ref.dtype)


def _prep_kernel_params(params):
    """Pre-scale g-gate columns by 2 (tanh-via-sigmoid), cast / lane-pad."""
    H = params["w_hh_t"].shape[0]
    g_scale = jnp.concatenate([
        jnp.ones((2 * H,), jnp.float32),
        2.0 * jnp.ones((H,), jnp.float32),
        jnp.ones((H,), jnp.float32),
    ])[None, :]
    w_ih = params["w_ih_t"] * g_scale                              # (D, 4H) f32
    w_hh = (params["w_hh_t"] * g_scale).astype(jnp.bfloat16)       # (H, 4H) bf16
    b = params["b"] * g_scale                                      # (1, 4H) f32
    w_fc = jnp.zeros((H, 128), jnp.bfloat16).at[:, :4].set(
        params["w_fc_t"].astype(jnp.bfloat16))                     # (H, 128)
    b_fc = jnp.zeros((1, 128), jnp.float32).at[:, :4].set(params["b_fc"])
    return w_ih, b, w_hh, w_fc, b_fc


def custom_lstm_model(x, params, *, batch_block=128):
    """Forward pass matching CustomLSTMModel.forward. x: [B, T, D] float32."""
    B, T, D = x.shape
    H = params["w_hh_t"].shape[0]
    H4 = 4 * H

    # Pad batch to the sublane multiple (8); if the padded batch exceeds the
    # batch block, pad further so it tiles evenly (grid splits across TCs).
    B_pad = max(8, ((B + 7) // 8) * 8)
    BB = min(B_pad, batch_block)
    B_pad = ((B_pad + BB - 1) // BB) * BB
    nb = B_pad // BB
    if B_pad != B:
        x = jnp.pad(x, ((0, B_pad - B), (0, 0), (0, 0)))

    # (B_pad, T, D) -> (nb, T*BB, D): batch-blocked, time-major inside each
    # block so timestep t of a block is rows [t*BB, (t+1)*BB).
    xt = jnp.transpose(x.astype(jnp.float32), (1, 0, 2))           # (T, B_pad, D)
    xt = xt.reshape(T, nb, BB, D).transpose(1, 0, 2, 3).reshape(nb, T * BB, D)

    w_ih, b, w_hh, w_fc, b_fc = _prep_kernel_params(params)

    out = pl.pallas_call(
        lstm_fused_kernel,
        out_shape=jax.ShapeDtypeStruct((B_pad, 128), jnp.float32),
        grid_spec=pltpu.PrefetchScalarGridSpec(
            num_scalar_prefetch=0,
            grid=(nb,),
            in_specs=[
                pl.BlockSpec((None, T * BB, D), lambda i: (i, 0, 0)),  # x block
                pl.BlockSpec((D, H4), lambda i: (0, 0)),               # w_ih
                pl.BlockSpec((1, H4), lambda i: (0, 0)),               # bias
                pl.BlockSpec((H, H4), lambda i: (0, 0)),               # w_hh bf16
                pl.BlockSpec((H, 128), lambda i: (0, 0)),              # w_fc bf16
                pl.BlockSpec((1, 128), lambda i: (0, 0)),              # b_fc
            ],
            out_specs=pl.BlockSpec((BB, 128), lambda i: (i, 0)),
            scratch_shapes=[pltpu.VMEM((T * BB, H4), jnp.float32)],
        ),
        compiler_params=pltpu.CompilerParams(
            dimension_semantics=("parallel",)),
    )(xt, w_ih, b, w_hh, w_fc, b_fc)
    return out[:B, :4]


def reference_forward(x, params):
    """Pure-JAX reference replicating torch.nn.LSTM(batch_first=True) + Linear."""
    B, T, D = x.shape
    H = params["w_hh_t"].shape[0]
    h = jnp.zeros((B, H), jnp.float32)
    c = jnp.zeros((B, H), jnp.float32)

    def step(carry, x_t):
        h, c = carry
        gates = x_t @ params["w_ih_t"] + h @ params["w_hh_t"] + params["b"][0]
        i_g = jax.nn.sigmoid(gates[:, 0 * H:1 * H])
        f_g = jax.nn.sigmoid(gates[:, 1 * H:2 * H])
        g_g = jnp.tanh(gates[:, 2 * H:3 * H])
        o_g = jax.nn.sigmoid(gates[:, 3 * H:4 * H])
        c = f_g * c + i_g * g_g
        h = o_g * jnp.tanh(c)
        return (h, c), None

    (h, c), _ = jax.lax.scan(step, (h, c), jnp.transpose(x, (1, 0, 2)))
    return h @ params["w_fc_t"] + params["b_fc"][0]


def init_params(key, input_size, hidden_size):
    """Deterministic init mimicking PyTorch's U(-1/sqrt(H), 1/sqrt(H))."""
    ks = jax.random.split(key, 6)
    bound = 1.0 / jnp.sqrt(hidden_size)
    H4 = 4 * hidden_size
    u = lambda k, shape: jax.random.uniform(k, shape, jnp.float32, -bound, bound)
    w_ih = u(ks[0], (H4, input_size))        # PyTorch weight_ih_l0
    w_hh = u(ks[1], (H4, hidden_size))       # PyTorch weight_hh_l0
    b_ih = u(ks[2], (H4,))
    b_hh = u(ks[3], (H4,))
    fc_bound = 1.0 / jnp.sqrt(hidden_size)
    w_fc = jax.random.uniform(ks[4], (4, hidden_size), jnp.float32,
                              -fc_bound, fc_bound)
    b_fc = jax.random.uniform(ks[5], (4,), jnp.float32, -fc_bound, fc_bound)
    return {
        "w_ih_t": w_ih.T,                    # (D, 4H)
        "w_hh_t": w_hh.T,                    # (H, 4H)
        "b": (b_ih + b_hh)[None, :],         # (1, 4H)
        "w_fc_t": w_fc.T,                    # (H, 4)
        "b_fc": b_fc[None, :],               # (1, 4)
    }


if __name__ == "__main__":
    B, T, D, H = 2, 8, 4, 32  # batch, seq, input_size, lstm_hidden_size
    key = jax.random.PRNGKey(0)
    k_x, k_p = jax.random.split(key)
    x = jax.random.normal(k_x, (B, T, D), jnp.float32)
    params = init_params(k_p, D, H)

    fwd = jax.jit(custom_lstm_model)
    out = jax.block_until_ready(fwd(x, params))

    ref = reference_forward(x, params)
    assert out.shape == (B, 4), out.shape
    # bf16 MXU operands on the recurrent / fc matmuls -> ~1e-3-level error.
    assert jnp.allclose(out, ref, atol=1e-2, rtol=1e-2), (out, ref)
    print("KERNEL_OK")
</pallas_src>

<mosaic_0001>
module attributes {stable_mosaic.version = 11 : i64} {
  func.func @lstm_fused_kernel(%arg0: i32, %arg1: memref<1x64x4xf32, #tpu.memory_space<vmem>>, %arg2: memref<4x128xf32, #tpu.memory_space<vmem>>, %arg3: memref<1x128xf32, #tpu.memory_space<vmem>>, %arg4: memref<32x128xbf16, #tpu.memory_space<vmem>>, %arg5: memref<32x128xbf16, #tpu.memory_space<vmem>>, %arg6: memref<1x128xf32, #tpu.memory_space<vmem>>, %arg7: memref<8x128xf32, #tpu.memory_space<vmem>>, %arg8: memref<64x128xf32, #tpu.memory_space<vmem>>) attributes {dimension_semantics = [#tpu.dimension_semantics<parallel>], iteration_bounds = array<i64: 1>, scalar_prefetch = 0 : i64, scratch_operands = 1 : i64, tpu.core_type = #tpu.core_type<tc>, window_params = [{transform_indices = @transform_0, window_bounds = array<i64: 1, 64, 4>}, {pipeline_mode = #tpu.pipeline_mode<synchronous>, transform_indices = @transform_1, window_bounds = array<i64: 4, 128>}, {pipeline_mode = #tpu.pipeline_mode<synchronous>, transform_indices = @transform_2, window_bounds = array<i64: 1, 128>}, {pipeline_mode = #tpu.pipeline_mode<synchronous>, transform_indices = @transform_3, window_bounds = array<i64: 32, 128>}, {pipeline_mode = #tpu.pipeline_mode<synchronous>, transform_indices = @transform_4, window_bounds = array<i64: 32, 128>}, {pipeline_mode = #tpu.pipeline_mode<synchronous>, transform_indices = @transform_5, window_bounds = array<i64: 1, 128>}, {transform_indices = @transform_6, window_bounds = array<i64: 8, 128>}]} {
    %c0 = arith.constant 0 : index
    %c0_0 = arith.constant 0 : index
    %c0_1 = arith.constant 0 : index
    %0 = vector.load %arg1[%c0, %c0_0, %c0_1] : memref<1x64x4xf32, #tpu.memory_space<vmem>>, vector<1x64x4xf32>
    %1 = vector.shape_cast %0 : vector<1x64x4xf32> to vector<64x4xf32>
    %c0_2 = arith.constant 0 : index
    %c0_3 = arith.constant 0 : index
    %2 = vector.load %arg2[%c0_2, %c0_3] : memref<4x128xf32, #tpu.memory_space<vmem>>, vector<4x128xf32>
    %cst = arith.constant dense<0.000000e+00> : vector<64x128xf32>
    %3 = tpu.matmul %1, %2, %cst {dimension_numbers = #tpu.dot_dimension_numbers<[1], [0], [0], [1], [0, 0, 1, 1], [], []>} : vector<64x4xf32>, vector<4x128xf32>, vector<64x128xf32> -> vector<64x128xf32>
    %c0_4 = arith.constant 0 : index
    %c0_5 = arith.constant 0 : index
    %4 = vector.load %arg3[%c0_4, %c0_5] : memref<1x128xf32, #tpu.memory_space<vmem>>, vector<1x128xf32>
    %5 = vector.broadcast %4 : vector<1x128xf32> to vector<64x128xf32>
    %6 = arith.addf %3, %5 : vector<64x128xf32>
    %c0_6 = arith.constant 0 : index
    %c0_7 = arith.constant 0 : index
    %7 = vector.load %arg8[%c0_6, %c0_7] : memref<64x128xf32, #tpu.memory_space<vmem>>, vector<64x128xf32>
    tpu.vector_store %arg8[%c0_6, %c0_7], %6 {strides = array<i32>} : memref<64x128xf32, #tpu.memory_space<vmem>>, vector<64x128xf32>,
    %c0_8 = arith.constant 0 : index
    %c0_9 = arith.constant 0 : index
    %8 = vector.load %arg4[%c0_8, %c0_9] : memref<32x128xbf16, #tpu.memory_space<vmem>>, vector<32x128xbf16>
    %cst_10 = arith.constant 0.000000e+00 : f32
    %9 = vector.broadcast %cst_10 : f32 to vector<8x32xf32>
    %cst_11 = arith.constant 0.000000e+00 : f32
    %10 = vector.broadcast %cst_11 : f32 to vector<8x32xf32>
    %c0_i32 = arith.constant 0 : i32
    %c8_i32 = arith.constant 8 : i32
    %11 = arith.muli %c0_i32, %c8_i32 : i32
    %12 = tpu.assume_multiple %11, 8 : i32
    %13 = arith.index_cast %12 : i32 to index
    %c0_12 = arith.constant 0 : index
    %14 = vector.load %arg8[%13, %c0_12] : memref<64x128xf32, #tpu.memory_space<vmem>>, vector<8x128xf32>
    %15 = arith.truncf %9 : vector<8x32xf32> to vector<8x32xbf16>
    %cst_13 = arith.constant dense<0.000000e+00> : vector<8x128xf32>
    %16 = tpu.matmul %15, %8, %cst_13 {dimension_numbers = #tpu.dot_dimension_numbers<[1], [0], [0], [1], [0, 0, 1, 1], [], []>} : vector<8x32xbf16>, vector<32x128xbf16>, vector<8x128xf32> -> vector<8x128xf32>
    %17 = arith.addf %14, %16 : vector<8x128xf32>
    %18 = arith.negf %17 : vector<8x128xf32>
    %19 = math.exp %18 : vector<8x128xf32>
    %cst_14 = arith.constant 1.000000e+00 : f32
    %20 = vector.broadcast %cst_14 : f32 to vector<8x128xf32>
    %21 = arith.addf %20, %19 : vector<8x128xf32>
    %22 = arith.divf %20, %21 : vector<8x128xf32>
    %23 = vector.extract_strided_slice %22 {offsets = [0, 0], sizes = [8, 32], strides = [1, 1]} : vector<8x128xf32> to vector<8x32xf32>
    %24 = vector.extract_strided_slice %22 {offsets = [0, 32], sizes = [8, 32], strides = [1, 1]} : vector<8x128xf32> to vector<8x32xf32>
    %25 = vector.extract_strided_slice %22 {offsets = [0, 64], sizes = [8, 32], strides = [1, 1]} : vector<8x128xf32> to vector<8x32xf32>
    %cst_15 = arith.constant 2.000000e+00 : f32
    %26 = vector.broadcast %cst_15 : f32 to vector<8x32xf32>
    %27 = arith.mulf %26, %25 : vector<8x32xf32>
    %cst_16 = arith.constant 1.000000e+00 : f32
    %28 = vector.broadcast %cst_16 : f32 to vector<8x32xf32>
    %29 = arith.subf %27, %28 : vector<8x32xf32>
    %30 = vector.extract_strided_slice %22 {offsets = [0, 96], sizes = [8, 32], strides = [1, 1]} : vector<8x128xf32> to vector<8x32xf32>
    %31 = arith.mulf %24, %10 : vector<8x32xf32>
    %32 = arith.mulf %23, %29 : vector<8x32xf32>
    %33 = arith.addf %31, %32 : vector<8x32xf32>
    %34 = math.tanh %33 : vector<8x32xf32>
    %35 = arith.mulf %30, %34 : vector<8x32xf32>
    %c1_i32 = arith.constant 1 : i32
    %c8_i32_17 = arith.constant 8 : i32
    %36 = arith.muli %c1_i32, %c8_i32_17 : i32
    %37 = tpu.assume_multiple %36, 8 : i32
    %38 = arith.index_cast %37 : i32 to index
    %c0_18 = arith.constant 0 : index
    %39 = vector.load %arg8[%38, %c0_18] : memref<64x128xf32, #tpu.memory_space<vmem>>, vector<8x128xf32>
    %40 = arith.truncf %35 : vector<8x32xf32> to vector<8x32xbf16>
    %cst_19 = arith.constant dense<0.000000e+00> : vector<8x128xf32>
    %41 = tpu.matmul %40, %8, %cst_19 {dimension_numbers = #tpu.dot_dimension_numbers<[1], [0], [0], [1], [0, 0, 1, 1], [], []>} : vector<8x32xbf16>, vector<32x128xbf16>, vector<8x128xf32> -> vector<8x128xf32>
    %42 = arith.addf %39, %41 : vector<8x128xf32>
    %43 = arith.negf %42 : vector<8x128xf32>
    %44 = math.exp %43 : vector<8x128xf32>
    %cst_20 = arith.constant 1.000000e+00 : f32
    %45 = vector.broadcast %cst_20 : f32 to vector<8x128xf32>
    %46 = arith.addf %45, %44 : vector<8x128xf32>
    %47 = arith.divf %45, %46 : vector<8x128xf32>
    %48 = vector.extract_strided_slice %47 {offsets = [0, 0], sizes = [8, 32], strides = [1, 1]} : vector<8x128xf32> to vector<8x32xf32>
    %49 = vector.extract_strided_slice %47 {offsets = [0, 32], sizes = [8, 32], strides = [1, 1]} : vector<8x128xf32> to vector<8x32xf32>
    %50 = vector.extract_strided_slice %47 {offsets = [0, 64], sizes = [8, 32], strides = [1, 1]} : vector<8x128xf32> to vector<8x32xf32>
    %cst_21 = arith.constant 2.000000e+00 : f32
    %51 = vector.broadcast %cst_21 : f32 to vector<8x32xf32>
    %52 = arith.mulf %51, %50 : vector<8x32xf32>
    %cst_22 = arith.constant 1.000000e+00 : f32
    %53 = vector.broadcast %cst_22 : f32 to vector<8x32xf32>
    %54 = arith.subf %52, %53 : vector<8x32xf32>
    %55 = vector.extract_strided_slice %47 {offsets = [0, 96], sizes = [8, 32], strides = [1, 1]} : vector<8x128xf32> to vector<8x32xf32>
    %56 = arith.mulf %49, %33 : vector<8x32xf32>
    %57 = arith.mulf %48, %54 : vector<8x32xf32>
    %58 = arith.addf %56, %57 : vector<8x32xf32>
    %59 = math.tanh %58 : vector<8x32xf32>
    %60 = arith.mulf %55, %59 : vector<8x32xf32>
    %c2_i32 = arith.constant 2 : i32
    %c8_i32_23 = arith.constant 8 : i32
    %61 = arith.muli %c2_i32, %c8_i32_23 : i32
    %62 = tpu.assume_multiple %61, 8 : i32
    %63 = arith.index_cast %62 : i32 to index
    %c0_24 = arith.constant 0 : index
    %64 = vector.load %arg8[%63, %c0_24] : memref<64x128xf32, #tpu.memory_space<vmem>>, vector<8x128xf32>
    %65 = arith.truncf %60 : vector<8x32xf32> to vector<8x32xbf16>
    %cst_25 = arith.constant dense<0.000000e+00> : vector<8x128xf32>
    %66 = tpu.matmul %65, %8, %cst_25 {dimension_numbers = #tpu.dot_dimension_numbers<[1], [0], [0], [1], [0, 0, 1, 1], [], []>} : vector<8x32xbf16>, vector<32x128xbf16>, vector<8x128xf32> -> vector<8x128xf32>
    %67 = arith.addf %64, %66 : vector<8x128xf32>
    %68 = arith.negf %67 : vector<8x128xf32>
    %69 = math.exp %68 : vector<8x128xf32>
    %cst_26 = arith.constant 1.000000e+00 : f32
    %70 = vector.broadcast %cst_26 : f32 to vector<8x128xf32>
    %71 = arith.addf %70, %69 : vector<8x128xf32>
    %72 = arith.divf %70, %71 : vector<8x128xf32>
    %73 = vector.extract_strided_slice %72 {offsets = [0, 0], sizes = [8, 32], strides = [1, 1]} : vector<8x128xf32> to vector<8x32xf32>
    %74 = vector.extract_strided_slice %72 {offsets = [0, 32], sizes = [8, 32], strides = [1, 1]} : vector<8x128xf32> to vector<8x32xf32>
    %75 = vector.extract_strided_slice %72 {offsets = [0, 64], sizes = [8, 32], strides = [1, 1]} : vector<8x128xf32> to vector<8x32xf32>
    %cst_27 = arith.constant 2.000000e+00 : f32
    %76 = vector.broadcast %cst_27 : f32 to vector<8x32xf32>
    %77 = arith.mulf %76, %75 : vector<8x32xf32>
    %cst_28 = arith.constant 1.000000e+00 : f32
    %78 = vector.broadcast %cst_28 : f32 to vector<8x32xf32>
    %79 = arith.subf %77, %78 : vector<8x32xf32>
    %80 = vector.extract_strided_slice %72 {offsets = [0, 96], sizes = [8, 32], strides = [1, 1]} : vector<8x128xf32> to vector<8x32xf32>
    %81 = arith.mulf %74, %58 : vector<8x32xf32>
    %82 = arith.mulf %73, %79 : vector<8x32xf32>
    %83 = arith.addf %81, %82 : vector<8x32xf32>
    %84 = math.tanh %83 : vector<8x32xf32>
    %85 = arith.mulf %80, %84 : vector<8x32xf32>
    %c3_i32 = arith.constant 3 : i32
    %c8_i32_29 = arith.constant 8 : i32
    %86 = arith.muli %c3_i32, %c8_i32_29 : i32
    %87 = tpu.assume_multiple %86, 8 : i32
    %88 = arith.index_cast %87 : i32 to index
    %c0_30 = arith.constant 0 : index
    %89 = vector.load %arg8[%88, %c0_30] : memref<64x128xf32, #tpu.memory_space<vmem>>, vector<8x128xf32>
    %90 = arith.truncf %85 : vector<8x32xf32> to vector<8x32xbf16>
    %cst_31 = arith.constant dense<0.000000e+00> : vector<8x128xf32>
    %91 = tpu.matmul %90, %8, %cst_31 {dimension_numbers = #tpu.dot_dimension_numbers<[1], [0], [0], [1], [0, 0, 1, 1], [], []>} : vector<8x32xbf16>, vector<32x128xbf16>, vector<8x128xf32> -> vector<8x128xf32>
    %92 = arith.addf %89, %91 : vector<8x128xf32>
    %93 = arith.negf %92 : vector<8x128xf32>
    %94 = math.exp %93 : vector<8x128xf32>
    %cst_32 = arith.constant 1.000000e+00 : f32
    %95 = vector.broadcast %cst_32 : f32 to vector<8x128xf32>
    %96 = arith.addf %95, %94 : vector<8x128xf32>
    %97 = arith.divf %95, %96 : vector<8x128xf32>
    %98 = vector.extract_strided_slice %97 {offsets = [0, 0], sizes = [8, 32], strides = [1, 1]} : vector<8x128xf32> to vector<8x32xf32>
    %99 = vector.extract_strided_slice %97 {offsets = [0, 32], sizes = [8, 32], strides = [1, 1]} : vector<8x128xf32> to vector<8x32xf32>
    %100 = vector.extract_strided_slice %97 {offsets = [0, 64], sizes = [8, 32], strides = [1, 1]} : vector<8x128xf32> to vector<8x32xf32>
    %cst_33 = arith.constant 2.000000e+00 : f32
    %101 = vector.broadcast %cst_33 : f32 to vector<8x32xf32>
    %102 = arith.mulf %101, %100 : vector<8x32xf32>
    %cst_34 = arith.constant 1.000000e+00 : f32
    %103 = vector.broadcast %cst_34 : f32 to vector<8x32xf32>
    %104 = arith.subf %102, %103 : vector<8x32xf32>
    %105 = vector.extract_strided_slice %97 {offsets = [0, 96], sizes = [8, 32], strides = [1, 1]} : vector<8x128xf32> to vector<8x32xf32>
    %106 = arith.mulf %99, %83 : vector<8x32xf32>
    %107 = arith.mulf %98, %104 : vector<8x32xf32>
    %108 = arith.addf %106, %107 : vector<8x32xf32>
    %109 = math.tanh %108 : vector<8x32xf32>
    %110 = arith.mulf %105, %109 : vector<8x32xf32>
    %c4_i32 = arith.constant 4 : i32
    %c8_i32_35 = arith.constant 8 : i32
    %111 = arith.muli %c4_i32, %c8_i32_35 : i32
    %112 = tpu.assume_multiple %111, 8 : i32
    %113 = arith.index_cast %112 : i32 to index
    %c0_36 = arith.constant 0 : index
    %114 = vector.load %arg8[%113, %c0_36] : memref<64x128xf32, #tpu.memory_space<vmem>>, vector<8x128xf32>
    %115 = arith.truncf %110 : vector<8x32xf32> to vector<8x32xbf16>
    %cst_37 = arith.constant dense<0.000000e+00> : vector<8x128xf32>
    %116 = tpu.matmul %115, %8, %cst_37 {dimension_numbers = #tpu.dot_dimension_numbers<[1], [0], [0], [1], [0, 0, 1, 1], [], []>} : vector<8x32xbf16>, vector<32x128xbf16>, vector<8x128xf32> -> vector<8x128xf32>
    %117 = arith.addf %114, %116 : vector<8x128xf32>
    %118 = arith.negf %117 : vector<8x128xf32>
    %119 = math.exp %118 : vector<8x128xf32>
    %cst_38 = arith.constant 1.000000e+00 : f32
    %120 = vector.broadcast %cst_38 : f32 to vector<8x128xf32>
    %121 = arith.addf %120, %119 : vector<8x128xf32>
    %122 = arith.divf %120, %121 : vector<8x128xf32>
    %123 = vector.extract_strided_slice %122 {offsets = [0, 0], sizes = [8, 32], strides = [1, 1]} : vector<8x128xf32> to vector<8x32xf32>
    %124 = vector.extract_strided_slice %122 {offsets = [0, 32], sizes = [8, 32], strides = [1, 1]} : vector<8x128xf32> to vector<8x32xf32>
    %125 = vector.extract_strided_slice %122 {offsets = [0, 64], sizes = [8, 32], strides = [1, 1]} : vector<8x128xf32> to vector<8x32xf32>
    %cst_39 = arith.constant 2.000000e+00 : f32
    %126 = vector.broadcast %cst_39 : f32 to vector<8x32xf32>
    %127 = arith.mulf %126, %125 : vector<8x32xf32>
    %cst_40 = arith.constant 1.000000e+00 : f32
    %128 = vector.broadcast %cst_40 : f32 to vector<8x32xf32>
    %129 = arith.subf %127, %128 : vector<8x32xf32>
    %130 = vector.extract_strided_slice %122 {offsets = [0, 96], sizes = [8, 32], strides = [1, 1]} : vector<8x128xf32> to vector<8x32xf32>
    %131 = arith.mulf %124, %108 : vector<8x32xf32>
    %132 = arith.mulf %123, %129 : vector<8x32xf32>
    %133 = arith.addf %131, %132 : vector<8x32xf32>
    %134 = math.tanh %133 : vector<8x32xf32>
    %135 = arith.mulf %130, %134 : vector<8x32xf32>
    %c5_i32 = arith.constant 5 : i32
    %c8_i32_41 = arith.constant 8 : i32
    %136 = arith.muli %c5_i32, %c8_i32_41 : i32
    %137 = tpu.assume_multiple %136, 8 : i32
    %138 = arith.index_cast %137 : i32 to index
    %c0_42 = arith.constant 0 : index
    %139 = vector.load %arg8[%138, %c0_42] : memref<64x128xf32, #tpu.memory_space<vmem>>, vector<8x128xf32>
    %140 = arith.truncf %135 : vector<8x32xf32> to vector<8x32xbf16>
    %cst_43 = arith.constant dense<0.000000e+00> : vector<8x128xf32>
    %141 = tpu.matmul %140, %8, %cst_43 {dimension_numbers = #tpu.dot_dimension_numbers<[1], [0], [0], [1], [0, 0, 1, 1], [], []>} : vector<8x32xbf16>, vector<32x128xbf16>, vector<8x128xf32> -> vector<8x128xf32>
    %142 = arith.addf %139, %141 : vector<8x128xf32>
    %143 = arith.negf %142 : vector<8x128xf32>
    %144 = math.exp %143 : vector<8x128xf32>
    %cst_44 = arith.constant 1.000000e+00 : f32
    %145 = vector.broadcast %cst_44 : f32 to vector<8x128xf32>
    %146 = arith.addf %145, %144 : vector<8x128xf32>
    %147 = arith.divf %145, %146 : vector<8x128xf32>
    %148 = vector.extract_strided_slice %147 {offsets = [0, 0], sizes = [8, 32], strides = [1, 1]} : vector<8x128xf32> to vector<8x32xf32>
    %149 = vector.extract_strided_slice %147 {offsets = [0, 32], sizes = [8, 32], strides = [1, 1]} : vector<8x128xf32> to vector<8x32xf32>
    %150 = vector.extract_strided_slice %147 {offsets = [0, 64], sizes = [8, 32], strides = [1, 1]} : vector<8x128xf32> to vector<8x32xf32>
    %cst_45 = arith.constant 2.000000e+00 : f32
    %151 = vector.broadcast %cst_45 : f32 to vector<8x32xf32>
    %152 = arith.mulf %151, %150 : vector<8x32xf32>
    %cst_46 = arith.constant 1.000000e+00 : f32
    %153 = vector.broadcast %cst_46 : f32 to vector<8x32xf32>
    %154 = arith.subf %152, %153 : vector<8x32xf32>
    %155 = vector.extract_strided_slice %147 {offsets = [0, 96], sizes = [8, 32], strides = [1, 1]} : vector<8x128xf32> to vector<8x32xf32>
    %156 = arith.mulf %149, %133 : vector<8x32xf32>
    %157 = arith.mulf %148, %154 : vector<8x32xf32>
    %158 = arith.addf %156, %157 : vector<8x32xf32>
    %159 = math.tanh %158 : vector<8x32xf32>
    %160 = arith.mulf %155, %159 : vector<8x32xf32>
    %c6_i32 = arith.constant 6 : i32
    %c8_i32_47 = arith.constant 8 : i32
    %161 = arith.muli %c6_i32, %c8_i32_47 : i32
    %162 = tpu.assume_multiple %161, 8 : i32
    %163 = arith.index_cast %162 : i32 to index
    %c0_48 = arith.constant 0 : index
    %164 = vector.load %arg8[%163, %c0_48] : memref<64x128xf32, #tpu.memory_space<vmem>>, vector<8x128xf32>
    %165 = arith.truncf %160 : vector<8x32xf32> to vector<8x32xbf16>
    %cst_49 = arith.constant dense<0.000000e+00> : vector<8x128xf32>
    %166 = tpu.matmul %165, %8, %cst_49 {dimension_numbers = #tpu.dot_dimension_numbers<[1], [0], [0], [1], [0, 0, 1, 1], [], []>} : vector<8x32xbf16>, vector<32x128xbf16>, vector<8x128xf32> -> vector<8x128xf32>
    %167 = arith.addf %164, %166 : vector<8x128xf32>
    %168 = arith.negf %167 : vector<8x128xf32>
    %169 = math.exp %168 : vector<8x128xf32>
    %cst_50 = arith.constant 1.000000e+00 : f32
    %170 = vector.broadcast %cst_50 : f32 to vector<8x128xf32>
    %171 = arith.addf %170, %169 : vector<8x128xf32>
    %172 = arith.divf %170, %171 : vector<8x128xf32>
    %173 = vector.extract_strided_slice %172 {offsets = [0, 0], sizes = [8, 32], strides = [1, 1]} : vector<8x128xf32> to vector<8x32xf32>
    %174 = vector.extract_strided_slice %172 {offsets = [0, 32], sizes = [8, 32], strides = [1, 1]} : vector<8x128xf32> to vector<8x32xf32>
    %175 = vector.extract_strided_slice %172 {offsets = [0, 64], sizes = [8, 32], strides = [1, 1]} : vector<8x128xf32> to vector<8x32xf32>
    %cst_51 = arith.constant 2.000000e+00 : f32
    %176 = vector.broadcast %cst_51 : f32 to vector<8x32xf32>
    %177 = arith.mulf %176, %175 : vector<8x32xf32>
    %cst_52 = arith.constant 1.000000e+00 : f32
    %178 = vector.broadcast %cst_52 : f32 to vector<8x32xf32>
    %179 = arith.subf %177, %178 : vector<8x32xf32>
    %180 = vector.extract_strided_slice %172 {offsets = [0, 96], sizes = [8, 32], strides = [1, 1]} : vector<8x128xf32> to vector<8x32xf32>
    %181 = arith.mulf %174, %158 : vector<8x32xf32>
    %182 = arith.mulf %173, %179 : vector<8x32xf32>
    %183 = arith.addf %181, %182 : vector<8x32xf32>
    %184 = math.tanh %183 : vector<8x32xf32>
    %185 = arith.mulf %180, %184 : vector<8x32xf32>
    %c7_i32 = arith.constant 7 : i32
    %c8_i32_53 = arith.constant 8 : i32
    %186 = arith.muli %c7_i32, %c8_i32_53 : i32
    %187 = tpu.assume_multiple %186, 8 : i32
    %188 = arith.index_cast %187 : i32 to index
    %c0_54 = arith.constant 0 : index
    %189 = vector.load %arg8[%188, %c0_54] : memref<64x128xf32, #tpu.memory_space<vmem>>, vector<8x128xf32>
    %190 = arith.truncf %185 : vector<8x32xf32> to vector<8x32xbf16>
    %cst_55 = arith.constant dense<0.000000e+00> : vector<8x128xf32>
    %191 = tpu.matmul %190, %8, %cst_55 {dimension_numbers = #tpu.dot_dimension_numbers<[1], [0], [0], [1], [0, 0, 1, 1], [], []>} : vector<8x32xbf16>, vector<32x128xbf16>, vector<8x128xf32> -> vector<8x128xf32>
    %192 = arith.addf %189, %191 : vector<8x128xf32>
    %193 = arith.negf %192 : vector<8x128xf32>
    %194 = math.exp %193 : vector<8x128xf32>
    %cst_56 = arith.constant 1.000000e+00 : f32
    %195 = vector.broadcast %cst_56 : f32 to vector<8x128xf32>
    %196 = arith.addf %195, %194 : vector<8x128xf32>
    %197 = arith.divf %195, %196 : vector<8x128xf32>
    %198 = vector.extract_strided_slice %197 {offsets = [0, 0], sizes = [8, 32], strides = [1, 1]} : vector<8x128xf32> to vector<8x32xf32>
    %199 = vector.extract_strided_slice %197 {offsets = [0, 32], sizes = [8, 32], strides = [1, 1]} : vector<8x128xf32> to vector<8x32xf32>
    %200 = vector.extract_strided_slice %197 {offsets = [0, 64], sizes = [8, 32], strides = [1, 1]} : vector<8x128xf32> to vector<8x32xf32>
    %cst_57 = arith.constant 2.000000e+00 : f32
    %201 = vector.broadcast %cst_57 : f32 to vector<8x32xf32>
    %202 = arith.mulf %201, %200 : vector<8x32xf32>
    %cst_58 = arith.constant 1.000000e+00 : f32
    %203 = vector.broadcast %cst_58 : f32 to vector<8x32xf32>
    %204 = arith.subf %202, %203 : vector<8x32xf32>
    %205 = vector.extract_strided_slice %197 {offsets = [0, 96], sizes = [8, 32], strides = [1, 1]} : vector<8x128xf32> to vector<8x32xf32>
    %206 = arith.mulf %199, %183 : vector<8x32xf32>
    %207 = arith.mulf %198, %204 : vector<8x32xf32>
    %208 = arith.addf %206, %207 : vector<8x32xf32>
    %209 = math.tanh %208 : vector<8x32xf32>
    %210 = arith.mulf %205, %209 : vector<8x32xf32>
    %c8_i32_59 = arith.constant 8 : i32
    %211 = arith.truncf %210 : vector<8x32xf32> to vector<8x32xbf16>
    %c0_60 = arith.constant 0 : index
    %c0_61 = arith.constant 0 : index
    %212 = vector.load %arg5[%c0_60, %c0_61] : memref<32x128xbf16, #tpu.memory_space<vmem>>, vector<32x128xbf16>
    %cst_62 = arith.constant dense<0.000000e+00> : vector<8x128xf32>
    %213 = tpu.matmul %211, %212, %cst_62 {dimension_numbers = #tpu.dot_dimension_numbers<[1], [0], [0], [1], [0, 0, 1, 1], [], []>} : vector<8x32xbf16>, vector<32x128xbf16>, vector<8x128xf32> -> vector<8x128xf32>
    %c0_63 = arith.constant 0 : index
    %c0_64 = arith.constant 0 : index
    %214 = vector.load %arg6[%c0_63, %c0_64] : memref<1x128xf32, #tpu.memory_space<vmem>>, vector<1x128xf32>
    %215 = vector.broadcast %214 : vector<1x128xf32> to vector<8x128xf32>
    %216 = arith.addf %213, %215 : vector<8x128xf32>
    %c0_65 = arith.constant 0 : index
    %c0_66 = arith.constant 0 : index
    %217 = vector.load %arg7[%c0_65, %c0_66] : memref<8x128xf32, #tpu.memory_space<vmem>>, vector<8x128xf32>
    tpu.vector_store %arg7[%c0_65, %c0_66], %216 {strides = array<i32>} : memref<8x128xf32, #tpu.memory_space<vmem>>, vector<8x128xf32>,
    return
  }
  func.func @transform_0(%arg0: i32) -> (i32, i32, i32) {
    %c0_i32 = arith.constant 0 : i32
    %c0_i32_0 = arith.constant 0 : i32
    %c0_i32_1 = arith.constant 0 : i32
    return %arg0, %c0_i32, %c0_i32_0 : i32, i32, i32
  }
  func.func @transform_1(%arg0: i32) -> (i32, i32) {
    %c0_i32 = arith.constant 0 : i32
    %c0_i32_0 = arith.constant 0 : i32
    %c0_i32_1 = arith.constant 0 : i32
    return %c0_i32, %c0_i32_0 : i32, i32
  }
  func.func @transform_2(%arg0: i32) -> (i32, i32) {
    %c0_i32 = arith.constant 0 : i32
    %c0_i32_0 = arith.constant 0 : i32
    %c0_i32_1 = arith.constant 0 : i32
    return %c0_i32, %c0_i32_0 : i32, i32
  }
  func.func @transform_3(%arg0: i32) -> (i32, i32) {
    %c0_i32 = arith.constant 0 : i32
    %c0_i32_0 = arith.constant 0 : i32
    %c0_i32_1 = arith.constant 0 : i32
    return %c0_i32, %c0_i32_0 : i32, i32
  }
  func.func @transform_4(%arg0: i32) -> (i32, i32) {
    %c0_i32 = arith.constant 0 : i32
    %c0_i32_0 = arith.constant 0 : i32
    %c0_i32_1 = arith.constant 0 : i32
    return %c0_i32, %c0_i32_0 : i32, i32
  }
  func.func @transform_5(%arg0: i32) -> (i32, i32) {
    %c0_i32 = arith.constant 0 : i32
    %c0_i32_0 = arith.constant 0 : i32
    %c0_i32_1 = arith.constant 0 : i32
    return %c0_i32, %c0_i32_0 : i32, i32
  }
  func.func @transform_6(%arg0: i32) -> (i32, i32) {
    %c0_i32 = arith.constant 0 : i32
    %c0_i32_0 = arith.constant 0 : i32
    return %arg0, %c0_i32 : i32, i32
  }
}

</mosaic_0001>

<bundles_post_ra>
// kernel: mul.17
= control target key start
LH: loop header
LB: loop body
LE: loop exit
PB: predicated region body
PF: predicated region fallthrough
CT: control target
= control target key end

     0   :  { %s34_s0 = inlined_call_operand.vmem [shape: f32[1,128], index: 0, kind: input, shape index: {}]   ;;  %s35_s1 = inlined_call_operand.vmem [shape: f32[1,128], index: 1, kind: input, shape index: {}]   ;;  %s36_s2 = inlined_call_operand.vmem [shape: f32[1,128], index: 2, kind: output, shape index: {}]  }
   0x1   :  { %v3_v0 = vld [vmem:[%s34_s0] sm:$0x1] }
   0x2   :  { %v4_v1 = vld [vmem:[%s35_s1] sm:$0x1] }
   0x3   :  { %v7_v2 = vmul.f32 %v4_v1, %v3_v0 }
   0x5   :  { %9 = vst [vmem:[%s36_s2] sm:$0x1] %v7_v2 }

// kernel: custom_lstm_model.1
= control target key start
LH: loop header
LB: loop body
LE: loop exit
PB: predicated region body
PF: predicated region fallthrough
CT: control target
= control target key end

     0   :  { %vm65_vm0 = vcmask 1043456   ;;  %v1087_v0 = vmov 0.0   ;;  %vm40_vm1 = vcmask 31744   ;;  %vm1088_vm2 = vmmov 0   ;;  %s1090_s7 = smov 64   ;;  %s1301_s3 = inlined_call_operand.vmem [shape: bf16[32,128], index: 3, kind: input, shape index: {}]   ;;  %s1302_s1 = inlined_call_operand.vmem [shape: f32[4,128], index: 1, kind: input, shape index: {}]   ;;  %s1303_s0 = inlined_call_operand.vmem [shape: f32[1,64,4], index: 0, kind: input, shape index: {}]   ;;  %s1304_s2 = inlined_call_operand.vmem [shape: f32[1,128], index: 2, kind: input, shape index: {}]   ;;  %s1305_s4 = inlined_call_operand.vmem [shape: bf16[32,128], index: 4, kind: input, shape index: {}]   ;;  %s1306_s5 = inlined_call_operand.vmem [shape: f32[1,128], index: 5, kind: input, shape index: {}]   ;;  %s1307_s6 = inlined_call_operand.vmem [shape: f32[8,128], index: 6, kind: output, shape index: {}]  }
   0x1   :  { %958 = vmatprep.subr.bf16.mxu1 %v1087_v0  ;;  %v1131_v1 = vld [vmem:[%s1301_s3] sm:$0xff]   ;;  %962 = vmatprep.mubr.msk.bf16.mxu1 %vm1088_vm2, %v1087_v0  ;;  %v25_v4 = vld [vmem:[%s1303_s0 + $0x8] sm:$0xff]  ;;  %v1089_v6 = vmov 0   ;;  %vm199_vm3 = vcmask 261120   ;;  %v26_v49 = vld [vmem:[%s1303_s0 + $0x10] sm:$0xff] }
   0x2   :  { %v32_v2 = vld [vmem:[%s1302_s1] sm:$0xf]  ;;  %959 = vmatpush3.bf16.msra.mxu1 %v1131_v1  ;;  %v1148_v5 = vld [vmem:[%s1301_s3 + $0x8] sm:$0xff]   ;;  %v27_v50 = vld [vmem:[%s1303_s0 + $0x18] sm:$0xff] }
   0x3   :  { %v24_v3 = vld [vmem:[%s1303_s0] sm:$0xff]  ;;  %944 = vmatprep.subr.msk.mxu0 %vm65_vm0, %v32_v2  ;;  %960 = vmatprep.subr.bf16.mxu1 %v1087_v0  ;;  %v29_v52 = vld [vmem:[%s1303_s0 + $0x28] sm:$0xff]  ;;  %v30_v53 = vld [vmem:[%s1303_s0 + $0x30] sm:$0xff] }
   0x4   :  { %945 = vmatpush3.msk.msra.mxu0 %vm65_vm0, %v32_v2  ;;  %946 = vmatprep.mubr.msk.f32.mxu0 %vm40_vm1, %v24_v3  ;;  %v1169_v7 = vld [vmem:[%s1304_s2] ss:$0 sm:$0xff]  ;;  %s1091_s2 = smov 32   ;;  %v31_v54 = vld [vmem:[%s1303_s0 + $0x38] sm:$0xff] }
   0x5   :  { %947 = vmatmul.mubr.msk.f32.vlgmr.msra.gmra.mrb[0].mxu0 %vm40_vm1, %v25_v4  ;;  %974 = vmatprep.subr.bf16.mxu0 %v1087_v0  ;;  %v28_v51 = vld [vmem:[%s1303_s0 + $0x20] sm:$0xff] }
   0x6   :  { %961 = vmatpush3.bf16.msra.mxu1 %v1148_v5  ;;  %975 = vmatpush3.bf16.msra.mxu0 %v1131_v1 }
   0x7   :  { %966 = vmatprep.subr.bf16.mxu1 %v1087_v0  ;;  %976 = vmatprep.subr.bf16.mxu0 %v1087_v0 }
   0x8   :  { %949 = vmatprep.mubr.msk.f32.mxu0 %vm40_vm1, %v26_v49 }
   0x9   :  { %963 = vmatmul.mubr.bf16.vlgmr.msra.gmra.mrb[0].mxu1 %v1089_v6  ;;  %950 = vmatmul.mubr.msk.f32.gmra.mrb[2].mxu0 %vm40_vm1, %v27_v50 }
   0xa   :  { %967 = vmatpush3.bf16.msra.mxu1 %v1131_v1  ;;  %970 = vmatprep.mubr.msk.bf16.mxu1 %vm1088_vm2, %v1087_v0 }
   0xb   :  { %968 = vmatprep.subr.bf16.mxu1 %v1087_v0  ;;  %977 = vmatpush3.bf16.msra.mxu0 %v1148_v5 }
   0xc   :  { %990 = vmatprep.subr.bf16.mxu0 %v1087_v0  ;;  %952 = vmatprep.mubr.msk.f32.mxu0 %vm40_vm1, %v28_v51 }
   0xd   :  { %953 = vmatmul.mubr.msk.f32.gmra.mrb[4].mxu0 %vm40_vm1, %v29_v52 }
   0xe   :  { %969 = vmatpush3.bf16.msra.mxu1 %v1148_v5  ;;  %955 = vmatprep.mubr.msk.f32.mxu0 %vm40_vm1, %v30_v53 }
   0xf   :  { %982 = vmatprep.subr.bf16.mxu1 %v1087_v0 }
  0x11   :  { %956 = vmatmul.mubr.msk.f32.gmra.mrb[6].mxu0 %vm40_vm1, %v31_v54 }
  0x12   :  { %978 = vmatprep.mubr.msk.bf16.mxu0 %vm1088_vm2, %v1087_v0 }
  0xd8   :  { %v948_v8 = vpop.f32.mrb[0].mxu0 }
  0xd9   :  { %v135_v9 = vpop.f32.mrb[1].mxu0  ;;  %v141_v32 = vadd.f32 %v948_v8, %v1169_v7 }
  0xda   :  { %v136_v10 = vadd.f32 %v1169_v7, %v135_v9 }
  0xdc   :  { %v237_v11 = vpop.f32.mrb[0].mxu1  ;;  %v951_v59 = vpop.f32.mrb[2].mxu0 }
  0xdd   :  { %v243_v12 = vadd.f32 %v237_v11, %v136_v10  ;;  %v964_v13 = vpop.f32.mrb[1].mxu1  ;;  %v145_v60 = vpop.f32.mrb[3].mxu0 }
  0xde   :  { %v240_v14 = vpop.f32.mrb[2].mxu1  ;;  %v146_v4 = vadd.f32 %v1169_v7, %v145_v60 }
  0xdf   :  { %v881_v15 = vmul.f32 -1.442695, %v243_v12  ;;  %v965_v16 = vpop.f32.mrb[3].mxu1 }
  0xe0   :  { %v1214_v61 = vpop.f32.mrb[4].mxu0 }
  0xe1   :  { %1039 = vpow2.f32 %v881_v15  ;;  %v1216_v62 = vpop.f32.mrb[5].mxu0 }
  0xe2   :  { %v156_v50 = vadd.f32 %v1169_v7, %v1216_v62 }
  0xe4   :  { %v1218_v63 = vpop.f32.mrb[6].mxu0 }
  0xe5   :  { %v1220_v2 = vpop.f32.mrb[7].mxu0 }
  0xeb   :  { %v1040_v17 = vpop.eup %1039 }
  0xec   :  { %v247_v18 = vadd.f32 1.0, %v1040_v17 }
  0xee   :  { %1041 = vrcp.f32 %v247_v18 }
  0xf8   :  { %v1042_v19 = vpop.eup %1041 }
  0xf9   :  { %v250_v20 = vmul.f32 2.0, %v1042_v19  ;;  %v252_v24 = vmul.f32 0.0, %v1042_v19 }
  0xfb   :  { %v882_v21 = vadd.f32 -1.0, %v250_v20 }
  0xfd   :  { %254 = vrot.lane.b32.xlu0 %v882_v21, %s1090_s7 }
 0x16f   :  { %v255_v22 = vpop.permute.xlu0 %254 }
 0x170   :  { %v257_v23 = vmul.f32 %v1042_v19, %v255_v22 }
 0x172   :  { %259 = vrot.lane.b32.xlu0 %v257_v23, %s1091_s2 }
 0x1e4   :  { %v260_v25 = vpop.permute.xlu0 %259 }
 0x1e5   :  { %v262_v26 = vadd.f32 %v260_v25, %v252_v24 }
 0x1e7   :  { %1043 = vtanh.f32 %v262_v26 }
 0x1f1   :  { %v1044_v27 = vpop.eup %1043 }
 0x1f2   :  { %265 = vrot.lane.b32.xlu1 %v1044_v27, %s1090_s7 }
 0x264   :  { %v266_v28 = vpop.permute.xlu1 %265 }
 0x265   :  { %v268_v29 = vmul.f32 %v1042_v19, %v266_v28  ;;  %v151_v28 = vadd.f32 %v951_v59, %v1169_v7 }
 0x267   :  { %v271_v30 = vpack.c.bf16 %v268_v29, %v268_v29 }
 0x269   :  { %273 = vrot.lane.b32.xlu1 %v271_v30, %s1091_s2 }
 0x2db   :  { %v274_v31 = vpop.permute.xlu1 %273 }
 0x2dc   :  { %971 = vmatmul.mubr.msk.bf16.vlgmr.msra.gmra.mrb[4].mxu1 %vm199_vm3, %v274_v31 }
 0x2dd   :  { %983 = vmatpush3.bf16.msra.mxu1 %v1131_v1  ;;  %986 = vmatprep.mubr.msk.bf16.mxu1 %vm1088_vm2, %v1087_v0 }
 0x2de   :  { %984 = vmatprep.subr.bf16.mxu1 %v1087_v0 }
 0x2e1   :  { %985 = vmatpush3.bf16.msra.mxu1 %v1148_v5 }
 0x2e2   :  { %998 = vmatprep.subr.bf16.mxu1 %v1087_v0 }
 0x3af   :  { %v312_v33 = vpop.f32.mrb[4].mxu1 }
 0x3b0   :  { %v318_v34 = vadd.f32 %v312_v33, %v141_v32  ;;  %v972_v35 = vpop.f32.mrb[5].mxu1 }
 0x3b1   :  { %v315_v36 = vpop.f32.mrb[6].mxu1 }
 0x3b2   :  { %v884_v37 = vmul.f32 -1.442695, %v318_v34  ;;  %v973_v38 = vpop.f32.mrb[7].mxu1 }
 0x3b4   :  { %1045 = vpow2.f32 %v884_v37 }
 0x3be   :  { %v1046_v39 = vpop.eup %1045 }
 0x3bf   :  { %v322_v40 = vadd.f32 1.0, %v1046_v39 }
 0x3c1   :  { %1047 = vrcp.f32 %v322_v40 }
 0x3cb   :  { %v1048_v41 = vpop.eup %1047 }
 0x3cc   :  { %v325_v42 = vmul.f32 2.0, %v1048_v41  ;;  %v327_v46 = vmul.f32 %v1048_v41, %v262_v26 }
 0x3ce   :  { %v885_v43 = vadd.f32 -1.0, %v325_v42 }
 0x3d0   :  { %329 = vrot.lane.b32.xlu0 %v885_v43, %s1090_s7 }
 0x442   :  { %v330_v44 = vpop.permute.xlu0 %329 }
 0x443   :  { %v332_v45 = vmul.f32 %v1048_v41, %v330_v44 }
 0x445   :  { %334 = vrot.lane.b32.xlu1 %v332_v45, %s1091_s2 }
 0x4b7   :  { %v335_v47 = vpop.permute.xlu1 %334 }
 0x4b8   :  { %v337_v48 = vadd.f32 %v335_v47, %v327_v46 }
 0x4ba   :  { %1049 = vtanh.f32 %v337_v48 }
 0x4c4   :  { %v1050_v55 = vpop.eup %1049 }
 0x4c5   :  { %340 = vrot.lane.b32.xlu0 %v1050_v55, %s1090_s7 }
 0x537   :  { %v341_v56 = vpop.permute.xlu0 %340 }
 0x538   :  { %v343_v57 = vmul.f32 %v1048_v41, %v341_v56 }
 0x53a   :  { %v346_v58 = vpack.c.bf16 %v343_v57, %v343_v57 }
 0x53c   :  { %348 = vrot.lane.b32.xlu1 %v346_v58, %s1091_s2 }
 0x5ae   :  { %v349_v3 = vpop.permute.xlu1 %348 }
 0x5af   :  { %979 = vmatmul.mubr.msk.bf16.vlgmr.msra.gmra.mrb[8].mxu0 %vm199_vm3, %v349_v3 }
 0x5b0   :  { %991 = vmatpush3.bf16.msra.mxu0 %v1131_v1  ;;  %994 = vmatprep.mubr.msk.bf16.mxu0 %vm1088_vm2, %v1087_v0 }
 0x5b1   :  { %992 = vmatprep.subr.bf16.mxu0 %v1087_v0 }
 0x5b4   :  { %993 = vmatpush3.bf16.msra.mxu0 %v1148_v5 }
 0x5b5   :  { %1006 = vmatprep.subr.bf16.mxu0 %v1087_v0 }
 0x682   :  { %v387_v6 = vpop.f32.mrb[8].mxu0 }
 0x683   :  { %v393_v8 = vadd.f32 %v387_v6, %v146_v4  ;;  %v980_v9 = vpop.f32.mrb[9].mxu0 }
 0x684   :  { %v390_v10 = vpop.f32.mrb[10].mxu0 }
 0x685   :  { %v887_v11 = vmul.f32 -1.442695, %v393_v8  ;;  %v981_v12 = vpop.f32.mrb[11].mxu0 }
 0x687   :  { %1051 = vpow2.f32 %v887_v11 }
 0x691   :  { %v1052_v13 = vpop.eup %1051 }
 0x692   :  { %v397_v14 = vadd.f32 1.0, %v1052_v13 }
 0x694   :  { %1053 = vrcp.f32 %v397_v14 }
 0x69e   :  { %v1054_v15 = vpop.eup %1053 }
 0x69f   :  { %v400_v16 = vmul.f32 2.0, %v1054_v15  ;;  %v402_v20 = vmul.f32 %v1054_v15, %v337_v48 }
 0x6a1   :  { %v888_v17 = vadd.f32 -1.0, %v400_v16 }
 0x6a3   :  { %404 = vrot.lane.b32.xlu0 %v888_v17, %s1090_s7 }
 0x715   :  { %v405_v18 = vpop.permute.xlu0 %404 }
 0x716   :  { %v407_v19 = vmul.f32 %v1054_v15, %v405_v18 }
 0x718   :  { %409 = vrot.lane.b32.xlu1 %v407_v19, %s1091_s2 }
 0x78a   :  { %v410_v21 = vpop.permute.xlu1 %409 }
 0x78b   :  { %v412_v22 = vadd.f32 %v410_v21, %v402_v20 }
 0x78d   :  { %1055 = vtanh.f32 %v412_v22 }
 0x797   :  { %v1056_v23 = vpop.eup %1055 }
 0x798   :  { %415 = vrot.lane.b32.xlu0 %v1056_v23, %s1090_s7 }
 0x80a   :  { %v416_v24 = vpop.permute.xlu0 %415 }
 0x80b   :  { %v418_v25 = vmul.f32 %v1054_v15, %v416_v24  ;;  %v161_v15 = vadd.f32 %v1214_v61, %v1169_v7 }
 0x80d   :  { %v421_v26 = vpack.c.bf16 %v418_v25, %v418_v25 }
 0x80f   :  { %423 = vrot.lane.b32.xlu1 %v421_v26, %s1091_s2 }
 0x881   :  { %v424_v27 = vpop.permute.xlu1 %423 }
 0x882   :  { %987 = vmatmul.mubr.msk.bf16.vlgmr.msra.gmra.mrb[8].mxu1 %vm199_vm3, %v424_v27 }
 0x883   :  { %999 = vmatpush3.bf16.msra.mxu1 %v1131_v1  ;;  %1002 = vmatprep.mubr.msk.bf16.mxu1 %vm1088_vm2, %v1087_v0 }
 0x884   :  { %1000 = vmatprep.subr.bf16.mxu1 %v1087_v0 }
 0x887   :  { %1001 = vmatpush3.bf16.msra.mxu1 %v1148_v5 }
 0x888   :  { %1014 = vmatprep.subr.bf16.mxu1 %v1087_v0 }
 0x955   :  { %v462_v29 = vpop.f32.mrb[8].mxu1 }
 0x956   :  { %v468_v30 = vadd.f32 %v462_v29, %v151_v28  ;;  %v988_v31 = vpop.f32.mrb[9].mxu1 }
 0x957   :  { %v465_v32 = vpop.f32.mrb[10].mxu1 }
 0x958   :  { %v890_v33 = vmul.f32 -1.442695, %v468_v30  ;;  %v989_v34 = vpop.f32.mrb[11].mxu1 }
 0x959   :  { %v166_v34 = vadd.f32 %v1169_v7, %v1220_v2 }
 0x95a   :  { %1057 = vpow2.f32 %v890_v33 }
 0x964   :  { %v1058_v35 = vpop.eup %1057 }
 0x965   :  { %v472_v36 = vadd.f32 1.0, %v1058_v35 }
 0x967   :  { %1059 = vrcp.f32 %v472_v36 }
 0x971   :  { %v1060_v37 = vpop.eup %1059 }
 0x972   :  { %v475_v38 = vmul.f32 2.0, %v1060_v37  ;;  %v477_v42 = vmul.f32 %v1060_v37, %v412_v22 }
 0x974   :  { %v891_v39 = vadd.f32 -1.0, %v475_v38 }
 0x976   :  { %479 = vrot.lane.b32.xlu0 %v891_v39, %s1090_s7 }
 0x9e8   :  { %v480_v40 = vpop.permute.xlu0 %479 }
 0x9e9   :  { %v482_v41 = vmul.f32 %v1060_v37, %v480_v40 }
 0x9eb   :  { %484 = vrot.lane.b32.xlu1 %v482_v41, %s1091_s2 }
 0xa5d   :  { %v485_v43 = vpop.permute.xlu1 %484 }
 0xa5e   :  { %v487_v44 = vadd.f32 %v485_v43, %v477_v42 }
 0xa60   :  { %1061 = vtanh.f32 %v487_v44 }
 0xa6a   :  { %v1062_v45 = vpop.eup %1061 }
 0xa6b   :  { %490 = vrot.lane.b32.xlu0 %v1062_v45, %s1090_s7 }
 0xadd   :  { %v491_v46 = vpop.permute.xlu0 %490 }
 0xade   :  { %v493_v47 = vmul.f32 %v1060_v37, %v491_v46 }
 0xae0   :  { %v496_v48 = vpack.c.bf16 %v493_v47, %v493_v47 }
 0xae2   :  { %498 = vrot.lane.b32.xlu1 %v496_v48, %s1091_s2 }
 0xb54   :  { %v499_v49 = vpop.permute.xlu1 %498 }
 0xb55   :  { %995 = vmatmul.mubr.msk.bf16.vlgmr.msra.gmra.mrb[12].mxu0 %vm199_vm3, %v499_v49 }
 0xb56   :  { %1007 = vmatpush3.bf16.msra.mxu0 %v1131_v1  ;;  %1010 = vmatprep.mubr.msk.bf16.mxu0 %vm1088_vm2, %v1087_v0 }
 0xb57   :  { %1008 = vmatprep.subr.bf16.mxu0 %v1087_v0 }
 0xb5a   :  { %1009 = vmatpush3.bf16.msra.mxu0 %v1148_v5 }
 0xb5b   :  { %1022 = vmatprep.subr.bf16.mxu0 %v1087_v0 }
 0xc28   :  { %v537_v51 = vpop.f32.mrb[12].mxu0 }
 0xc29   :  { %v543_v52 = vadd.f32 %v537_v51, %v156_v50  ;;  %v996_v53 = vpop.f32.mrb[13].mxu0 }
 0xc2a   :  { %v540_v54 = vpop.f32.mrb[14].mxu0 }
 0xc2b   :  { %v893_v55 = vmul.f32 -1.442695, %v543_v52  ;;  %v997_v56 = vpop.f32.mrb[15].mxu0 }
 0xc2d   :  { %1063 = vpow2.f32 %v893_v55  ;;  %v171_v55 = vadd.f32 %v1218_v63, %v1169_v7 }
 0xc37   :  { %v1064_v57 = vpop.eup %1063 }
 0xc38   :  { %v547_v58 = vadd.f32 1.0, %v1064_v57 }
 0xc3a   :  { %1065 = vrcp.f32 %v547_v58 }
 0xc44   :  { %v1066_v59 = vpop.eup %1065 }
 0xc45   :  { %v550_v60 = vmul.f32 2.0, %v1066_v59  ;;  %v552_v62 = vmul.f32 %v1066_v59, %v487_v44 }
 0xc47   :  { %v894_v3 = vadd.f32 -1.0, %v550_v60 }
 0xc49   :  { %554 = vrot.lane.b32.xlu0 %v894_v3, %s1090_s7 }
 0xcbb   :  { %v555_v4 = vpop.permute.xlu0 %554 }
 0xcbc   :  { %v557_v6 = vmul.f32 %v1066_v59, %v555_v4 }
 0xcbe   :  { %559 = vrot.lane.b32.xlu1 %v557_v6, %s1091_s2 }
 0xd30   :  { %v560_v8 = vpop.permute.xlu1 %559 }
 0xd31   :  { %v562_v9 = vadd.f32 %v560_v8, %v552_v62 }
 0xd33   :  { %1067 = vtanh.f32 %v562_v9 }
 0xd3d   :  { %v1068_v10 = vpop.eup %1067 }
 0xd3e   :  { %565 = vrot.lane.b32.xlu0 %v1068_v10, %s1090_s7 }
 0xdb0   :  { %v566_v11 = vpop.permute.xlu0 %565 }
 0xdb1   :  { %v568_v12 = vmul.f32 %v1066_v59, %v566_v11 }
 0xdb3   :  { %v571_v13 = vpack.c.bf16 %v568_v12, %v568_v12 }
 0xdb5   :  { %573 = vrot.lane.b32.xlu1 %v571_v13, %s1091_s2  ;;  %v1037_v13 = vld [vmem:[%s1305_s4] sm:$0xff]  }
 0xe27   :  { %v574_v14 = vpop.permute.xlu1 %573 }
 0xe28   :  { %1003 = vmatmul.mubr.msk.bf16.vlgmr.msra.gmra.mrb[12].mxu1 %vm199_vm3, %v574_v14  ;;  %v1038_v14 = vld [vmem:[%s1305_s4 + $0x8] sm:$0xff]  }
 0xe29   :  { %1015 = vmatpush3.bf16.msra.mxu1 %v1131_v1  ;;  %1018 = vmatprep.mubr.msk.bf16.mxu1 %vm1088_vm2, %v1087_v0 }
 0xe2a   :  { %1016 = vmatprep.subr.bf16.mxu1 %v1087_v0 }
 0xe2d   :  { %1017 = vmatpush3.bf16.msra.mxu1 %v1148_v5 }
 0xefb   :  { %v612_v16 = vpop.f32.mrb[12].mxu1 }
 0xefc   :  { %v618_v17 = vadd.f32 %v612_v16, %v161_v15  ;;  %v1004_v18 = vpop.f32.mrb[13].mxu1 }
 0xefd   :  { %v615_v19 = vpop.f32.mrb[14].mxu1 }
 0xefe   :  { %v896_v20 = vmul.f32 -1.442695, %v618_v17  ;;  %v1005_v21 = vpop.f32.mrb[15].mxu1 }
 0xf00   :  { %1069 = vpow2.f32 %v896_v20  ;;  %v904_v20 = vld [vmem:[%s1306_s5] ss:$0 sm:$0xff] }
 0xf0a   :  { %v1070_v22 = vpop.eup %1069 }
 0xf0b   :  { %v622_v23 = vadd.f32 1.0, %v1070_v22 }
 0xf0d   :  { %1071 = vrcp.f32 %v622_v23 }
 0xf17   :  { %v1072_v1 = vpop.eup %1071 }
 0xf18   :  { %v625_v24 = vmul.f32 2.0, %v1072_v1  ;;  %v627_v61 = vmul.f32 %v1072_v1, %v562_v9 }
 0xf1a   :  { %v897_v25 = vadd.f32 -1.0, %v625_v24 }
 0xf1c   :  { %629 = vrot.lane.b32.xlu0 %v897_v25, %s1090_s7 }
 0xf8e   :  { %v630_v26 = vpop.permute.xlu0 %629 }
 0xf8f   :  { %v632_v5 = vmul.f32 %v1072_v1, %v630_v26 }
 0xf91   :  { %634 = vrot.lane.b32.xlu1 %v632_v5, %s1091_s2 }
0x1003   :  { %v635_v27 = vpop.permute.xlu1 %634 }
0x1004   :  { %v637_v28 = vadd.f32 %v635_v27, %v627_v61 }
0x1006   :  { %1073 = vtanh.f32 %v637_v28 }
0x1010   :  { %v1074_v29 = vpop.eup %1073 }
0x1011   :  { %640 = vrot.lane.b32.xlu0 %v1074_v29, %s1090_s7 }
0x1083   :  { %v641_v30 = vpop.permute.xlu0 %640 }
0x1084   :  { %v643_v31 = vmul.f32 %v1072_v1, %v641_v30 }
0x1086   :  { %v646_v32 = vpack.c.bf16 %v643_v31, %v643_v31 }
0x1088   :  { %648 = vrot.lane.b32.xlu1 %v646_v32, %s1091_s2 }
0x10fa   :  { %v649_v33 = vpop.permute.xlu1 %648 }
0x10fb   :  { %1011 = vmatmul.mubr.msk.bf16.vlgmr.msra.gmra.mrb[16].mxu0 %vm199_vm3, %v649_v33 }
0x10fc   :  { %1026 = vmatprep.mubr.msk.bf16.mxu0 %vm1088_vm2, %v1087_v0  ;;  %1023 = vmatpush3.bf16.msra.mxu0 %v1037_v13 }
0x10fd   :  { %1024 = vmatprep.subr.bf16.mxu0 %v1087_v0 }
0x1100   :  { %1025 = vmatpush3.bf16.msra.mxu0 %v1038_v14 }
0x11ce   :  { %v687_v35 = vpop.f32.mrb[16].mxu0 }
0x11cf   :  { %v693_v36 = vadd.f32 %v687_v35, %v166_v34  ;;  %v1012_v37 = vpop.f32.mrb[17].mxu0 }
0x11d0   :  { %v690_v38 = vpop.f32.mrb[18].mxu0 }
0x11d1   :  { %v899_v39 = vmul.f32 -1.442695, %v693_v36  ;;  %v1013_v40 = vpop.f32.mrb[19].mxu0 }
0x11d3   :  { %1075 = vpow2.f32 %v899_v39 }
0x11dd   :  { %v1076_v41 = vpop.eup %1075 }
0x11de   :  { %v697_v42 = vadd.f32 1.0, %v1076_v41 }
0x11e0   :  { %1077 = vrcp.f32 %v697_v42 }
0x11ea   :  { %v1078_v43 = vpop.eup %1077 }
0x11eb   :  { %v700_v44 = vmul.f32 2.0, %v1078_v43  ;;  %v702_v2 = vmul.f32 %v1078_v43, %v637_v28 }
0x11ed   :  { %v900_v45 = vadd.f32 -1.0, %v700_v44 }
0x11ef   :  { %704 = vrot.lane.b32.xlu0 %v900_v45, %s1090_s7 }
0x1261   :  { %v705_v46 = vpop.permute.xlu0 %704 }
0x1262   :  { %v707_v47 = vmul.f32 %v1078_v43, %v705_v46 }
0x1264   :  { %709 = vrot.lane.b32.xlu1 %v707_v47, %s1091_s2 }
0x12d6   :  { %v710_v48 = vpop.permute.xlu1 %709 }
0x12d7   :  { %v712_v49 = vadd.f32 %v710_v48, %v702_v2 }
0x12d9   :  { %1079 = vtanh.f32 %v712_v49 }
0x12e3   :  { %v1080_v50 = vpop.eup %1079 }
0x12e4   :  { %715 = vrot.lane.b32.xlu0 %v1080_v50, %s1090_s7 }
0x1356   :  { %v716_v51 = vpop.permute.xlu0 %715 }
0x1357   :  { %v718_v52 = vmul.f32 %v1078_v43, %v716_v51 }
0x1359   :  { %v721_v53 = vpack.c.bf16 %v718_v52, %v718_v52 }
0x135b   :  { %723 = vrot.lane.b32.xlu1 %v721_v53, %s1091_s2 }
0x13cd   :  { %v724_v54 = vpop.permute.xlu1 %723 }
0x13ce   :  { %1019 = vmatmul.mubr.msk.bf16.vlgmr.msra.gmra.mrb[16].mxu1 %vm199_vm3, %v724_v54 }
0x14a1   :  { %v762_v56 = vpop.f32.mrb[16].mxu1 }
0x14a2   :  { %v768_v57 = vadd.f32 %v762_v56, %v171_v55  ;;  %v1020_v58 = vpop.f32.mrb[17].mxu1 }
0x14a3   :  { %v765_v59 = vpop.f32.mrb[18].mxu1 }
0x14a4   :  { %v902_v60 = vmul.f32 -1.442695, %v768_v57  ;;  %v1021_v3 = vpop.f32.mrb[19].mxu1 }
0x14a6   :  { %1081 = vpow2.f32 %v902_v60 }
0x14b0   :  { %v1082_v4 = vpop.eup %1081 }
0x14b1   :  { %v772_v6 = vadd.f32 1.0, %v1082_v4 }
0x14b3   :  { %1083 = vrcp.f32 %v772_v6 }
0x14bd   :  { %v1084_v62 = vpop.eup %1083 }
0x14be   :  { %v775_v8 = vmul.f32 2.0, %v1084_v62  ;;  %v777_v7 = vmul.f32 %v1084_v62, %v712_v49 }
0x14c0   :  { %v903_v9 = vadd.f32 -1.0, %v775_v8 }
0x14c2   :  { %779 = vrot.lane.b32.xlu0 %v903_v9, %s1090_s7 }
0x1534   :  { %v780_v10 = vpop.permute.xlu0 %779 }
0x1535   :  { %v782_v11 = vmul.f32 %v1084_v62, %v780_v10 }
0x1537   :  { %784 = vrot.lane.b32.xlu1 %v782_v11, %s1091_s2 }
0x15a9   :  { %v785_v63 = vpop.permute.xlu1 %784 }
0x15aa   :  { %v787_v12 = vadd.f32 %v785_v63, %v777_v7 }
0x15ac   :  { %1085 = vtanh.f32 %v787_v12 }
0x15b6   :  { %v1086_v15 = vpop.eup %1085 }
0x15b7   :  { %790 = vrot.lane.b32.xlu0 %v1086_v15, %s1090_s7 }
0x1629   :  { %v791_v16 = vpop.permute.xlu0 %790 }
0x162a   :  { %v793_v17 = vmul.f32 %v1084_v62, %v791_v16 }
0x162c   :  { %v794_v18 = vpack.c.bf16 %v793_v17, %v793_v17 }
0x162e   :  { %807 = vrot.lane.b32.xlu1 %v794_v18, %s1091_s2 }
0x16a0   :  { %v808_v19 = vpop.permute.xlu1 %807 }
0x16a1   :  { %1027 = vmatmul.mubr.msk.bf16.vlgmr.msra.gmra.mrb[20].mxu0 %vm199_vm3, %v808_v19 }
0x1774   :  { %v858_v21 = vpop.f32.mrb[20].mxu0 }
0x1775   :  { %v859_v22 = vadd.f32 %v904_v20, %v858_v21  ;;  %v1028_v23 = vpop.f32.mrb[21].mxu0 }
0x1776   :  { %v861_v0 = vpop.f32.mrb[22].mxu0 }
0x1777   :  { %864 = vst [vmem:[%s1307_s6] sm:$0xff] %v859_v22  ;;  %v1029_v1 = vpop.f32.mrb[23].mxu0 }

</bundles_post_ra>
